<compile_context>
chip_gen: v5e
topology: v5e:2x2
jax: 0.10.0
libtpu: 0.0.40
codegen_flags: <defaults>
</compile_context>

<pallas_src>
import numpy as np
import jax
import jax.numpy as jnp
from jax.experimental import pallas as pl
from jax.experimental.pallas import tpu as pltpu

BIG_NUMBER = 10000000000.0
NUM_OUTPUTS = 53    # fixed in TiramisuModelV2.__init__
HEAD_LANES = 128    # fused (logits | value | zero-pad) head width (lane-dense)


def _round_up(x, m):
    return (x + m - 1) // m * m


def _nbytes(a):
    return int(np.prod(a.shape)) * a.dtype.itemsize


def tiramisu_fused_kernel(x_ref, mask_ref,
                          w1_ref, b1_ref,
                          w2_ref, b2_ref,
                          wh_ref, bh_ref,
                          out_ref):
    """One batch tile: 2 SlimFC(relu) layers + fused (logits|value|pad) head + mask."""
    x = x_ref[...]

    # hidden layer 1: SlimFC(relu). Matmul in operand dtype, accumulate in f32,
    # bias-add / ReLU in f32 (v5e has no bf16 VPU path).
    h = jnp.dot(x, w1_ref[...], preferred_element_type=jnp.float32) + b1_ref[...]
    h = jnp.maximum(h, 0.0)

    # hidden layer 2: SlimFC(relu)
    h = jnp.dot(h.astype(w2_ref.dtype), w2_ref[...],
                preferred_element_type=jnp.float32) + b2_ref[...]
    h = jnp.maximum(h, 0.0)

    # fused head: columns [0:53] = logits weights, column 53 = value weights,
    # columns 54..127 = zero pad  ->  one lane-dense (TB, 128) matmul + store.
    head = jnp.dot(h.astype(wh_ref.dtype), wh_ref[...],
                   preferred_element_type=jnp.float32) + bh_ref[...]

    # action-mask penalty: for a binary mask this is bit-identical to
    # `head - BIG_NUMBER * (1 - mask)` in f32 (the logit is fully absorbed),
    # but it is one compare+select instead of sub+mul+sub.
    out_ref[...] = jnp.where(mask_ref[...] > 0.0, head, jnp.float32(-BIG_NUMBER))


def tiramisu_forward(obs, action_mask, params, *, block_b=512,
                     compute_dtype=jnp.float32):
    """obs: (B, D) f32, action_mask: (B, 53) f32 (0/1).

    Returns (logits (B, 53) f32, value (B, 1) f32).
    compute_dtype=jnp.bfloat16 halves operand bytes / uses the bf16 MXU rate on
    v6e/v7x; accumulation and all elementwise work stay in f32.
    """
    obs = jnp.asarray(obs, jnp.float32)
    action_mask = jnp.asarray(action_mask, jnp.float32)
    B, d_in = obs.shape
    h1 = params["w1"].shape[1]
    h2 = params["w2"].shape[1]
    num_out = params["wl"].shape[1]
    assert num_out + 1 <= HEAD_LANES

    # ---- fuse logits + value heads into one lane-dense (h2, 128) weight ----
    wh = jnp.zeros((h2, HEAD_LANES), jnp.float32)
    wh = wh.at[:, :num_out].set(params["wl"])
    wh = wh.at[:, num_out:num_out + 1].set(params["wv"])
    bh = jnp.zeros((1, HEAD_LANES), jnp.float32)
    bh = bh.at[:, :num_out].set(params["bl"])
    bh = bh.at[:, num_out:num_out + 1].set(params["bv"])

    # mask padded to 128 lanes with 1.0 so the value column (53) and the zero
    # pad are never penalized (they are sliced away anyway).
    mask_p = jnp.ones((B, HEAD_LANES), jnp.float32)
    mask_p = mask_p.at[:, :num_out].set(action_mask)

    # ---- batch tiling: sublane-multiple tile, pad batch to a tile multiple ----
    tb = _round_up(min(block_b, max(B, 1)), 8)
    Bp = _round_up(B, tb)
    obs_p = obs
    if Bp != B:
        obs_p = jnp.pad(obs_p, ((0, Bp - B), (0, 0)))
        mask_p = jnp.pad(mask_p, ((0, Bp - B), (0, 0)), constant_values=1.0)

    cdt = jnp.dtype(compute_dtype)
    obs_c = obs_p.astype(cdt)
    w1 = params["w1"].astype(cdt)
    w2 = params["w2"].astype(cdt)
    whc = wh.astype(cdt)
    b1 = params["b1"]  # biases stay f32 (added to the f32 accumulator)
    b2 = params["b2"]

    grid = (Bp // tb,)
    row_map = lambda i: (i, 0)      # batch-tiled streams
    resident = lambda i: (0, 0)     # weights/biases stay VMEM-resident

    flops = 2 * Bp * (d_in * h1 + h1 * h2 + h2 * HEAD_LANES)
    bytes_accessed = (_nbytes(obs_c) + _nbytes(mask_p)
                      + _nbytes(w1) + _nbytes(w2) + _nbytes(whc)
                      + _nbytes(b1) + _nbytes(b2) + _nbytes(bh)
                      + Bp * HEAD_LANES * 4)

    out = pl.pallas_call(
        tiramisu_fused_kernel,
        out_shape=jax.ShapeDtypeStruct((Bp, HEAD_LANES), jnp.float32),
        grid=grid,
        in_specs=[
            pl.BlockSpec((tb, d_in), row_map),         # obs tile
            pl.BlockSpec((tb, HEAD_LANES), row_map),   # mask tile
            pl.BlockSpec((d_in, h1), resident),        # w1
            pl.BlockSpec((1, h1), resident),           # b1
            pl.BlockSpec((h1, h2), resident),          # w2
            pl.BlockSpec((1, h2), resident),           # b2
            pl.BlockSpec((h2, HEAD_LANES), resident),  # fused head weight
            pl.BlockSpec((1, HEAD_LANES), resident),   # fused head bias
        ],
        out_specs=pl.BlockSpec((tb, HEAD_LANES), row_map),
        compiler_params=pltpu.CompilerParams(
            dimension_semantics=("parallel",)),        # v7x: both TCs split batch
        cost_estimate=pl.CostEstimate(
            flops=flops, transcendentals=0, bytes_accessed=bytes_accessed),
    )(obs_c, mask_p, w1, b1, w2, b2, whc, bh)

    logits = out[:B, :num_out]
    value = out[:B, num_out:num_out + 1]
    return logits, value


# --------------------------- parameter construction ---------------------------

def normc_init(key, in_size, out_size, std=1.0):
    """RLlib normc_initializer: each output unit's weight vector has L2-norm == std.

    Stored as (in_size, out_size) so the kernel computes x @ W."""
    w = jax.random.normal(key, (in_size, out_size), dtype=jnp.float32)
    norm = jnp.sqrt(jnp.sum(w * w, axis=0, keepdims=True))
    return w * (std / norm)


def make_params(key, in_size, layer_sizes, num_outputs):
    keys = jax.random.split(key, len(layer_sizes) + 2)
    sizes = [in_size] + list(layer_sizes)
    params = {}
    # two hidden layers (kernel is written for exactly 2, matching layer_sizes below)
    params["w1"] = normc_init(keys[0], sizes[0], sizes[1], std=1.0)
    params["b1"] = jnp.zeros((1, sizes[1]), dtype=jnp.float32)
    params["w2"] = normc_init(keys[1], sizes[1], sizes[2], std=1.0)
    params["b2"] = jnp.zeros((1, sizes[2]), dtype=jnp.float32)
    # logits head
    params["wl"] = normc_init(keys[2], sizes[2], num_outputs, std=0.01)
    params["bl"] = jnp.zeros((1, num_outputs), dtype=jnp.float32)
    # value branch
    params["wv"] = normc_init(keys[3], sizes[2], 1, std=0.01)
    params["bv"] = jnp.zeros((1, 1), dtype=jnp.float32)
    return params


def reference_forward(obs, action_mask, params):
    h = jnp.maximum(obs @ params["w1"] + params["b1"], 0.0)
    h = jnp.maximum(h @ params["w2"] + params["b2"], 0.0)
    logits = h @ params["wl"] + params["bl"] - BIG_NUMBER * (1.0 - action_mask)
    value = h @ params["wv"] + params["bv"]
    return logits, value


if __name__ == "__main__":
    # Small shapes consistent with the module:
    #   obs_space['representation'] shape = (4, 8)  -> flattened in_size = 32
    #   layer_sizes = [64, 32], num_outputs = 53 (fixed in __init__)
    key = jax.random.PRNGKey(0)
    k_obs, k_mask, k_param = jax.random.split(key, 3)

    batch = 8
    rep_shape = (4, 8)
    in_size = int(np.prod(rep_shape))
    layer_sizes = [64, 32]
    num_outputs = NUM_OUTPUTS

    # input_dict['obs_flat']['representation'] arrives already flattened: (B, 32)
    obs = jax.random.normal(k_obs, (batch,) + rep_shape,
                            dtype=jnp.float32).reshape(batch, in_size)
    action_mask = (jax.random.uniform(k_mask, (batch, num_outputs)) > 0.3
                   ).astype(jnp.float32)

    params = make_params(k_param, in_size, layer_sizes, num_outputs)

    # ---- f32 path (exact SlimFC semantics) ----
    logits, value = tiramisu_forward(obs, action_mask, params)
    jax.block_until_ready((logits, value))

    ref_logits, ref_value = reference_forward(obs, action_mask, params)
    np.testing.assert_allclose(np.asarray(logits), np.asarray(ref_logits),
                               rtol=1e-5, atol=1e-3)
    np.testing.assert_allclose(np.asarray(value), np.asarray(ref_value),
                               rtol=1e-5, atol=1e-4)

    # value_function() semantics: value.squeeze(1)
    value_fn = value.squeeze(1)
    assert logits.shape == (batch, num_outputs)
    assert value_fn.shape == (batch,)

    # ---- exercise the batch grid + padding path (multiple grid steps) ----
    B2 = 300
    k_obs2, k_mask2 = jax.random.split(jax.random.PRNGKey(1))
    obs2 = jax.random.normal(k_obs2, (B2, in_size), dtype=jnp.float32)
    mask2 = (jax.random.uniform(k_mask2, (B2, num_outputs)) > 0.3
             ).astype(jnp.float32)
    logits2, value2 = tiramisu_forward(obs2, mask2, params, block_b=128)
    jax.block_until_ready((logits2, value2))
    ref_logits2, ref_value2 = reference_forward(obs2, mask2, params)
    np.testing.assert_allclose(np.asarray(logits2), np.asarray(ref_logits2),
                               rtol=1e-5, atol=1e-3)
    np.testing.assert_allclose(np.asarray(value2), np.asarray(ref_value2),
                               rtol=1e-5, atol=1e-4)

    # ---- bf16-operand / f32-accumulate path (v6e / v7x fast path) ----
    logits_bf, value_bf = tiramisu_forward(obs, action_mask, params,
                                           compute_dtype=jnp.bfloat16)
    jax.block_until_ready((logits_bf, value_bf))
    np.testing.assert_allclose(np.asarray(logits_bf), np.asarray(ref_logits),
                               rtol=2e-2, atol=2e-2)
    np.testing.assert_allclose(np.asarray(value_bf), np.asarray(ref_value),
                               rtol=2e-2, atol=2e-2)

    print("KERNEL_OK")
</pallas_src>

<mosaic_0001>
module attributes {stable_mosaic.version = 11 : i64} {
  func.func @tiramisu_fused_kernel(%arg0: i32, %arg1: memref<8x32xf32, #tpu.memory_space<vmem>>, %arg2: memref<8x128xf32, #tpu.memory_space<vmem>>, %arg3: memref<32x64xf32, #tpu.memory_space<vmem>>, %arg4: memref<1x64xf32, #tpu.memory_space<vmem>>, %arg5: memref<64x32xf32, #tpu.memory_space<vmem>>, %arg6: memref<1x32xf32, #tpu.memory_space<vmem>>, %arg7: memref<32x128xf32, #tpu.memory_space<vmem>>, %arg8: memref<1x128xf32, #tpu.memory_space<vmem>>, %arg9: memref<8x128xf32, #tpu.memory_space<vmem>>) attributes {dimension_semantics = [#tpu.dimension_semantics<parallel>], iteration_bounds = array<i64: 1>, scalar_prefetch = 0 : i64, scratch_operands = 0 : i64, tpu.core_type = #tpu.core_type<tc>, window_params = [{transform_indices = @transform_0, window_bounds = array<i64: 8, 32>}, {transform_indices = @transform_1, window_bounds = array<i64: 8, 128>}, {pipeline_mode = #tpu.pipeline_mode<synchronous>, transform_indices = @transform_2, window_bounds = array<i64: 32, 64>}, {pipeline_mode = #tpu.pipeline_mode<synchronous>, transform_indices = @transform_3, window_bounds = array<i64: 1, 64>}, {pipeline_mode = #tpu.pipeline_mode<synchronous>, transform_indices = @transform_4, window_bounds = array<i64: 64, 32>}, {pipeline_mode = #tpu.pipeline_mode<synchronous>, transform_indices = @transform_5, window_bounds = array<i64: 1, 32>}, {pipeline_mode = #tpu.pipeline_mode<synchronous>, transform_indices = @transform_6, window_bounds = array<i64: 32, 128>}, {pipeline_mode = #tpu.pipeline_mode<synchronous>, transform_indices = @transform_7, window_bounds = array<i64: 1, 128>}, {transform_indices = @transform_8, window_bounds = array<i64: 8, 128>}]} {
    %c0 = arith.constant 0 : index
    %c0_0 = arith.constant 0 : index
    %0 = vector.load %arg1[%c0, %c0_0] : memref<8x32xf32, #tpu.memory_space<vmem>>, vector<8x32xf32>
    %c0_1 = arith.constant 0 : index
    %c0_2 = arith.constant 0 : index
    %1 = vector.load %arg3[%c0_1, %c0_2] : memref<32x64xf32, #tpu.memory_space<vmem>>, vector<32x64xf32>
    %cst = arith.constant dense<0.000000e+00> : vector<8x64xf32>
    %2 = tpu.matmul %0, %1, %cst {dimension_numbers = #tpu.dot_dimension_numbers<[1], [0], [0], [1], [0, 0, 1, 1], [], []>} : vector<8x32xf32>, vector<32x64xf32>, vector<8x64xf32> -> vector<8x64xf32>
    %c0_3 = arith.constant 0 : index
    %c0_4 = arith.constant 0 : index
    %3 = vector.load %arg4[%c0_3, %c0_4] : memref<1x64xf32, #tpu.memory_space<vmem>>, vector<1x64xf32>
    %4 = vector.broadcast %3 : vector<1x64xf32> to vector<8x64xf32>
    %5 = arith.addf %2, %4 : vector<8x64xf32>
    %cst_5 = arith.constant 0.000000e+00 : f32
    %6 = vector.broadcast %cst_5 : f32 to vector<8x64xf32>
    %7 = arith.maximumf %5, %6 : vector<8x64xf32>
    %c0_6 = arith.constant 0 : index
    %c0_7 = arith.constant 0 : index
    %8 = vector.load %arg5[%c0_6, %c0_7] : memref<64x32xf32, #tpu.memory_space<vmem>>, vector<64x32xf32>
    %cst_8 = arith.constant dense<0.000000e+00> : vector<8x32xf32>
    %9 = tpu.matmul %7, %8, %cst_8 {dimension_numbers = #tpu.dot_dimension_numbers<[1], [0], [0], [1], [0, 0, 1, 1], [], []>} : vector<8x64xf32>, vector<64x32xf32>, vector<8x32xf32> -> vector<8x32xf32>
    %c0_9 = arith.constant 0 : index
    %c0_10 = arith.constant 0 : index
    %10 = vector.load %arg6[%c0_9, %c0_10] : memref<1x32xf32, #tpu.memory_space<vmem>>, vector<1x32xf32>
    %11 = vector.broadcast %10 : vector<1x32xf32> to vector<8x32xf32>
    %12 = arith.addf %9, %11 : vector<8x32xf32>
    %cst_11 = arith.constant 0.000000e+00 : f32
    %13 = vector.broadcast %cst_11 : f32 to vector<8x32xf32>
    %14 = arith.maximumf %12, %13 : vector<8x32xf32>
    %c0_12 = arith.constant 0 : index
    %c0_13 = arith.constant 0 : index
    %15 = vector.load %arg7[%c0_12, %c0_13] : memref<32x128xf32, #tpu.memory_space<vmem>>, vector<32x128xf32>
    %cst_14 = arith.constant dense<0.000000e+00> : vector<8x128xf32>
    %16 = tpu.matmul %14, %15, %cst_14 {dimension_numbers = #tpu.dot_dimension_numbers<[1], [0], [0], [1], [0, 0, 1, 1], [], []>} : vector<8x32xf32>, vector<32x128xf32>, vector<8x128xf32> -> vector<8x128xf32>
    %c0_15 = arith.constant 0 : index
    %c0_16 = arith.constant 0 : index
    %17 = vector.load %arg8[%c0_15, %c0_16] : memref<1x128xf32, #tpu.memory_space<vmem>>, vector<1x128xf32>
    %18 = vector.broadcast %17 : vector<1x128xf32> to vector<8x128xf32>
    %19 = arith.addf %16, %18 : vector<8x128xf32>
    %c0_17 = arith.constant 0 : index
    %c0_18 = arith.constant 0 : index
    %20 = vector.load %arg2[%c0_17, %c0_18] : memref<8x128xf32, #tpu.memory_space<vmem>>, vector<8x128xf32>
    %cst_19 = arith.constant 0.000000e+00 : f32
    %21 = vector.broadcast %cst_19 : f32 to vector<8x128xf32>
    %22 = arith.cmpf ogt, %20, %21 : vector<8x128xf32>
    %cst_20 = arith.constant -1.000000e+10 : f32
    %23 = vector.broadcast %cst_20 : f32 to vector<8x128xf32>
    %24 = arith.select %22, %19, %23 : vector<8x128xi1>, vector<8x128xf32>
    %c0_21 = arith.constant 0 : index
    %c0_22 = arith.constant 0 : index
    %25 = vector.load %arg9[%c0_21, %c0_22] : memref<8x128xf32, #tpu.memory_space<vmem>>, vector<8x128xf32>
    tpu.vector_store %arg9[%c0_21, %c0_22], %24 {strides = array<i32>} : memref<8x128xf32, #tpu.memory_space<vmem>>, vector<8x128xf32>,
    return
  }
  func.func @transform_0(%arg0: i32) -> (i32, i32) {
    %c0_i32 = arith.constant 0 : i32
    %c0_i32_0 = arith.constant 0 : i32
    return %arg0, %c0_i32 : i32, i32
  }
  func.func @transform_1(%arg0: i32) -> (i32, i32) {
    %c0_i32 = arith.constant 0 : i32
    %c0_i32_0 = arith.constant 0 : i32
    return %arg0, %c0_i32 : i32, i32
  }
  func.func @transform_2(%arg0: i32) -> (i32, i32) {
    %c0_i32 = arith.constant 0 : i32
    %c0_i32_0 = arith.constant 0 : i32
    %c0_i32_1 = arith.constant 0 : i32
    return %c0_i32, %c0_i32_0 : i32, i32
  }
  func.func @transform_3(%arg0: i32) -> (i32, i32) {
    %c0_i32 = arith.constant 0 : i32
    %c0_i32_0 = arith.constant 0 : i32
    %c0_i32_1 = arith.constant 0 : i32
    return %c0_i32, %c0_i32_0 : i32, i32
  }
  func.func @transform_4(%arg0: i32) -> (i32, i32) {
    %c0_i32 = arith.constant 0 : i32
    %c0_i32_0 = arith.constant 0 : i32
    %c0_i32_1 = arith.constant 0 : i32
    return %c0_i32, %c0_i32_0 : i32, i32
  }
  func.func @transform_5(%arg0: i32) -> (i32, i32) {
    %c0_i32 = arith.constant 0 : i32
    %c0_i32_0 = arith.constant 0 : i32
    %c0_i32_1 = arith.constant 0 : i32
    return %c0_i32, %c0_i32_0 : i32, i32
  }
  func.func @transform_6(%arg0: i32) -> (i32, i32) {
    %c0_i32 = arith.constant 0 : i32
    %c0_i32_0 = arith.constant 0 : i32
    %c0_i32_1 = arith.constant 0 : i32
    return %c0_i32, %c0_i32_0 : i32, i32
  }
  func.func @transform_7(%arg0: i32) -> (i32, i32) {
    %c0_i32 = arith.constant 0 : i32
    %c0_i32_0 = arith.constant 0 : i32
    %c0_i32_1 = arith.constant 0 : i32
    return %c0_i32, %c0_i32_0 : i32, i32
  }
  func.func @transform_8(%arg0: i32) -> (i32, i32) {
    %c0_i32 = arith.constant 0 : i32
    %c0_i32_0 = arith.constant 0 : i32
    return %arg0, %c0_i32 : i32, i32
  }
}

</mosaic_0001>

<bundles_post_ra>
// kernel: tpu_custom_call.1
= control target key start
LH: loop header
LB: loop body
LE: loop exit
PB: predicated region body
PF: predicated region fallthrough
CT: control target
= control target key end

     0   :  { %s299_s0 = inlined_call_operand.vmem [shape: f32[8,32], index: 0, kind: input, shape index: {}]   ;;  %s300_s1 = inlined_call_operand.vmem [shape: f32[8,128], index: 1, kind: input, shape index: {}]   ;;  %s301_s2 = inlined_call_operand.vmem [shape: f32[32,64], index: 2, kind: input, shape index: {}]   ;;  %s302_s3 = inlined_call_operand.vmem [shape: f32[1,64], index: 3, kind: input, shape index: {}]   ;;  %s303_s4 = inlined_call_operand.vmem [shape: f32[64,32], index: 4, kind: input, shape index: {}]   ;;  %s304_s5 = inlined_call_operand.vmem [shape: f32[1,32], index: 5, kind: input, shape index: {}]   ;;  %s305_s6 = inlined_call_operand.vmem [shape: f32[32,128], index: 6, kind: input, shape index: {}]   ;;  %s306_s7 = inlined_call_operand.vmem [shape: f32[1,128], index: 7, kind: input, shape index: {}]   ;;  %s307_s8 = inlined_call_operand.hbm [shape: f32[8,128], index: 8, kind: output, shape index: {}]  }
   0x1   :  { %v34_v0 = vld [vmem:[%s301_s2 + $0x18] sm:$0xff]  ;;  %v33_v1 = vld [vmem:[%s301_s2 + $0x10] sm:$0xff]  ;;  %v32_v3 = vld [vmem:[%s301_s2 + $0x8] sm:$0xff] }
   0x2   :  { %55 = vmatpush.msra.mxu0 %v34_v0  ;;  %v71_v2 = vld [vmem:[%s303_s4 + $0x38] sm:$0xff]  ;;  %v70_v4 = vld [vmem:[%s303_s4 + $0x30] sm:$0xff]  ;;  %v31_v5 = vld [vmem:[%s301_s2] sm:$0xff] }
   0x3   :  { %88 = vmatpush.msra.mxu1 %v71_v2  ;;  %v69_v6 = vld [vmem:[%s303_s4 + $0x28] sm:$0xff] }
   0x4   :  { %56 = vmatpush.msra.mxu0 %v33_v1 }
   0x5   :  { %89 = vmatpush.msra.mxu1 %v70_v4 }
   0x6   :  { %13 = vsyncpa [#allocation3], 0  ;;  %57 = vmatpush.msra.mxu0 %v32_v3  ;;  %v30_v7 = vld [vmem:[%s299_s0] sm:$0xff]  ;;  %vm39_vm0 = vcmask 261120   ;;  %v67_v9 = vld [vmem:[%s303_s4 + $0x18] sm:$0xff]  ;;  %vm76_vm1 = vcmask 523264  }
   0x7   :  { %v68_v8 = vld [vmem:[%s303_s4 + $0x20] sm:$0xff]  ;;  %90 = vmatpush.msra.mxu1 %v69_v6  ;;  %v66_v10 = vld [vmem:[%s303_s4 + $0x10] sm:$0xff]  ;;  %v65_v11 = vld [vmem:[%s303_s4 + $0x8] sm:$0xff]  ;;  %s185_s21 = smov [#allocation2]   ;;  %s143_s2 = sshll.u32 %s307_s8, 4  ;;  %s144_s2 = int_to_ptr.hbm [resolvable:$true] %s143_s2 }
   0x8   :  { %58 = vmatpush.msra.mxu0 %v31_v5  ;;  %v64_v12 = vld [vmem:[%s303_s4] sm:$0xff]  ;;  %v104_v13 = vld [vmem:[%s305_s6 + $0x18] sm:$0xff]  ;;  %v103_v18 = vld [vmem:[%s305_s6 + $0x10] sm:$0xff] }
   0x9   :  { %152 = vmatmul.msk.f32.vlgmr.msra.gmra.mxu0 %vm39_vm0, %v30_v7  ;;  %91 = vmatpush.msra.mxu1 %v68_v8  ;;  %v156_v14 = vld [vmem:[%s302_s3] ss:$0 sm:$0xff]  ;;  %v102_v19 = vld [vmem:[%s305_s6 + $0x8] sm:$0xff] }
   0xa   :  { %124 = vmatpush.msra.mxu2 %v104_v13  ;;  %v101_v20 = vld [vmem:[%s305_s6] sm:$0xff]  ;;  %s141_s6 = sshll.u32 %s185_s21, 4  ;;  %s142_s6 = int_to_ptr.vmem [resolvable:$true] %s141_s6 }
   0xb   :  { %92 = vmatpush.msra.mxu1 %v67_v9  ;;  %v157_v21 = vld [vmem:[%s304_s5] ss:$0 sm:$0xff] }
   0xc   :  { %125 = vmatpush.msra.mxu2 %v103_v18  ;;  %v158_v25 = vld [vmem:[%s306_s7] ss:$0 sm:$0xff] }
   0xd   :  { %93 = vmatpush.msra.mxu1 %v66_v10  ;;  %v132_v26 = vld [vmem:[%s300_s1] sm:$0xff] }
   0xe   :  { %126 = vmatpush.msra.mxu2 %v102_v19  ;;  %vm133_vm2 = vcmp.gt.f32.partialorder %v132_v26, 0.0 }
   0xf   :  { %94 = vmatpush.msra.mxu1 %v65_v11 }
  0x10   :  { %127 = vmatpush.msra.mxu2 %v101_v20 }
  0x11   :  { %95 = vmatpush.msra.mxu1 %v64_v12 }
  0x86   :  { %v60_v15 = vpop.f32.mrf.mxu0 }
  0x87   :  { %v61_v16 = vadd.f32 %v156_v14, %v60_v15 }
  0x89   :  { %v63_v17 = vmax.f32 %v61_v16, 0.0 }
  0x8b   :  { %153 = vmatmul.msk.f32.vlgmr.msra.gmra.mxu1 %vm76_vm1, %v63_v17 }
 0x108   :  { %v97_v22 = vpop.f32.mrf.mxu1 }
 0x109   :  { %v98_v23 = vadd.f32 %v157_v21, %v97_v22 }
 0x10b   :  { %v100_v24 = vmax.f32 %v98_v23, 0.0 }
 0x10d   :  { %154 = vmatmul.msk.f32.vlgmr.msra.gmra.mxu2 %vm39_vm0, %v100_v24 }
 0x190   :  { %v129_v27 = vpop.f32.mrf.mxu2 }
 0x191   :  { %v130_v28 = vadd.f32 %v158_v25, %v129_v27 }
 0x193   :  { %v134_v29 = vsel %vm133_vm2, %v130_v28, -1e+10 }
 0x194   :  { %135 = vst [vmem:[#allocation2] sm:$0xff] %v134_v29 }
 0x195   :  { %146 = dma.vmem_to_hbm [thread:$0]  %s142_s6, 128, %s144_s2, [#allocation3]  }
 0x196   :  { %183 = dma.done.wait [#allocation3], 128  }
 0x197   :  { %184 = vsyncadd [#allocation3], 4294967168 }
 0x198   :  { %151 = vsyncpa [#allocation3], 1 }

</bundles_post_ra>
